<compile_context>
chip_gen: v7x
topology: tpu7x:2x2x1
jax: 0.10.0
libtpu: 0.0.40
codegen_flags: <defaults>
</compile_context>

<pallas_src>
import jax
import jax.numpy as jnp
from jax.experimental import pallas as pl
from jax.experimental.pallas import tpu as pltpu


def _round_up(x, m):
    return (x + m - 1) // m * m


def fcn_kernel(x_ref, w1_ref, b1_ref, w2_ref, b2_ref, w3_ref, b3_ref, out_ref):
    # fc1 + tanh  (bf16 inputs, f32 accumulation, f32 activation math)
    h1 = jnp.tanh(
        jnp.dot(x_ref[...], w1_ref[...], preferred_element_type=jnp.float32)
        + b1_ref[...]
    ).astype(jnp.bfloat16)
    # fc2 + relu
    h2 = jnp.maximum(
        jnp.dot(h1, w2_ref[...], preferred_element_type=jnp.float32) + b2_ref[...],
        0.0,
    ).astype(jnp.bfloat16)
    # fc3 (class axis padded to 128 lanes; padded lanes carry bias = -1e30)
    logits = (
        jnp.dot(h2, w3_ref[...], preferred_element_type=jnp.float32) + b3_ref[...]
    )
    # numerically stabilized softmax over the class axis; padded lanes -> exp(...) = 0
    m = jnp.max(logits, axis=-1, keepdims=True)
    e = jnp.exp(logits - m)
    out_ref[...] = e * pl.reciprocal(jnp.sum(e, axis=-1, keepdims=True), approx=False)


def fcn_forward(x_nchw, params, num_classes):
    w1, b1, w2, b2, w3, b3 = params
    B = x_nchw.shape[0]
    x = x_nchw.reshape(B, -1).astype(jnp.float32)          # (B, 784)
    K = x.shape[1]
    K_PAD = _round_up(K, 128)                               # 896 = 7 * 128
    N_PAD = _round_up(max(num_classes, 128), 128)           # lane-dense output

    # Batch tiling: big batches use TILE_B = 512 (x tile = 512*896*2B ~ 0.9 MiB,
    # double-buffered ~1.8 MiB -> fits default scoped VMEM on v5e/v6e/v7x).
    B8 = _round_up(B, 8)
    if B8 >= 512:
        TILE_B = 512
        B_PAD = _round_up(B, TILE_B)
    else:
        TILE_B = B8
        B_PAD = B8

    # Wrapper-side padding / dtype plumbing (free layout work, not compute).
    xp = jnp.zeros((B_PAD, K_PAD), jnp.bfloat16).at[:B, :K].set(x.astype(jnp.bfloat16))
    w1p = jnp.zeros((K_PAD, w1.shape[1]), jnp.bfloat16).at[:K, :].set(
        w1.astype(jnp.bfloat16))
    w2b = w2.astype(jnp.bfloat16)
    w3p = jnp.zeros((w3.shape[0], N_PAD), jnp.bfloat16).at[:, :num_classes].set(
        w3.astype(jnp.bfloat16))
    b1f = b1.astype(jnp.float32)
    b2f = b2.astype(jnp.float32)
    b3p = jnp.full((1, N_PAD), -1e30, jnp.float32).at[:, :num_classes].set(
        b3.astype(jnp.float32))

    grid = (B_PAD // TILE_B,)
    vmem_full = pl.BlockSpec(memory_space=pltpu.MemorySpace.VMEM)  # whole array, resident

    out = pl.pallas_call(
        fcn_kernel,
        out_shape=jax.ShapeDtypeStruct((B_PAD, N_PAD), jnp.float32),
        grid=grid,
        in_specs=[
            pl.BlockSpec((TILE_B, K_PAD), lambda i: (i, 0)),   # x: tiled over batch
            vmem_full, vmem_full,                              # w1, b1
            vmem_full, vmem_full,                              # w2, b2
            vmem_full, vmem_full,                              # w3, b3
        ],
        out_specs=pl.BlockSpec((TILE_B, N_PAD), lambda i: (i, 0)),
        compiler_params=pltpu.CompilerParams(
            dimension_semantics=("parallel",),                 # megacore on v7x
        ),
    )(xp, w1p, b1f, w2b, b2f, w3p, b3p)

    return out[:B, :num_classes]


def init_params(key, num_classes):
    """Deterministic init mimicking nn.Linear's U(-1/sqrt(fan_in), 1/sqrt(fan_in))."""
    def linear(key, fan_in, fan_out):
        kw, kb = jax.random.split(key)
        bound = 1.0 / jnp.sqrt(fan_in)
        w = jax.random.uniform(kw, (fan_in, fan_out), jnp.float32, -bound, bound)
        b = jax.random.uniform(kb, (1, fan_out), jnp.float32, -bound, bound)
        return w, b

    k1, k2, k3 = jax.random.split(key, 3)
    w1, b1 = linear(k1, 784, 64)
    w2, b2 = linear(k2, 64, 32)
    w3, b3 = linear(k3, 32, num_classes)
    return w1, b1, w2, b2, w3, b3


def reference_bf16(x_nchw, params):
    """Plain-JAX reference with the same bf16-input / f32-accumulate recipe."""
    w1, b1, w2, b2, w3, b3 = params
    B = x_nchw.shape[0]
    xb = x_nchw.reshape(B, -1).astype(jnp.bfloat16)
    h1 = jnp.tanh(jnp.dot(xb, w1.astype(jnp.bfloat16),
                          preferred_element_type=jnp.float32) + b1)
    h2 = jnp.maximum(jnp.dot(h1.astype(jnp.bfloat16), w2.astype(jnp.bfloat16),
                             preferred_element_type=jnp.float32) + b2, 0.0)
    logits = jnp.dot(h2.astype(jnp.bfloat16), w3.astype(jnp.bfloat16),
                     preferred_element_type=jnp.float32) + b3
    return jax.nn.softmax(logits, axis=1)


def reference_f32(x_nchw, params):
    w1, b1, w2, b2, w3, b3 = params
    B = x_nchw.shape[0]
    xf = x_nchw.reshape(B, -1)
    h1 = jnp.tanh(xf @ w1 + b1)
    h2 = jnp.maximum(h1 @ w2 + b2, 0.0)
    return jax.nn.softmax(h2 @ w3 + b3, axis=1)


if __name__ == "__main__":
    num_classes = 10
    key = jax.random.PRNGKey(0)
    kx, kp = jax.random.split(key)

    # Small MNIST-like input: (batch=8, channels=1, 28, 28)
    x = jax.random.normal(kx, (8, 1, 28, 28), dtype=jnp.float32)
    params = init_params(kp, num_classes)

    out = fcn_forward(x, params, num_classes)
    out = jax.block_until_ready(out)

    assert out.shape == (8, num_classes)
    # Exact-recipe reference (bf16 inputs, f32 accumulation).
    ref_b = reference_bf16(x, params)
    assert jnp.allclose(out, ref_b, atol=1e-4, rtol=1e-4)
    # Full-f32 reference: semantics preserved within bf16 cast error.
    ref_f = reference_f32(x, params)
    assert jnp.allclose(out, ref_f, atol=3e-2, rtol=3e-2)
    assert jnp.allclose(jnp.sum(out, axis=1), 1.0, atol=1e-5)

    print("KERNEL_OK")
</pallas_src>

<mosaic_0001>
module attributes {stable_mosaic.version = 11 : i64} {
  func.func @fcn_kernel(%arg0: i32, %arg1: memref<8x896xbf16, #tpu.memory_space<vmem>>, %arg2: memref<896x64xbf16, #tpu.memory_space<vmem>>, %arg3: memref<1x64xf32, #tpu.memory_space<vmem>>, %arg4: memref<64x32xbf16, #tpu.memory_space<vmem>>, %arg5: memref<1x32xf32, #tpu.memory_space<vmem>>, %arg6: memref<32x128xbf16, #tpu.memory_space<vmem>>, %arg7: memref<1x128xf32, #tpu.memory_space<vmem>>, %arg8: memref<8x128xf32, #tpu.memory_space<vmem>>) attributes {dimension_semantics = [#tpu.dimension_semantics<parallel>], iteration_bounds = array<i64: 1>, scalar_prefetch = 0 : i64, scratch_operands = 0 : i64, tpu.core_type = #tpu.core_type<tc>, window_params = [{transform_indices = @transform_0, window_bounds = array<i64: 8, 896>}, {pipeline_mode = #tpu.pipeline_mode<synchronous>, transform_indices = @transform_1, window_bounds = array<i64: 896, 64>}, {pipeline_mode = #tpu.pipeline_mode<synchronous>, transform_indices = @transform_2, window_bounds = array<i64: 1, 64>}, {pipeline_mode = #tpu.pipeline_mode<synchronous>, transform_indices = @transform_3, window_bounds = array<i64: 64, 32>}, {pipeline_mode = #tpu.pipeline_mode<synchronous>, transform_indices = @transform_4, window_bounds = array<i64: 1, 32>}, {pipeline_mode = #tpu.pipeline_mode<synchronous>, transform_indices = @transform_5, window_bounds = array<i64: 32, 128>}, {pipeline_mode = #tpu.pipeline_mode<synchronous>, transform_indices = @transform_6, window_bounds = array<i64: 1, 128>}, {transform_indices = @transform_7, window_bounds = array<i64: 8, 128>}]} {
    %c0 = arith.constant 0 : index
    %c0_0 = arith.constant 0 : index
    %0 = vector.load %arg1[%c0, %c0_0] : memref<8x896xbf16, #tpu.memory_space<vmem>>, vector<8x896xbf16>
    %c0_1 = arith.constant 0 : index
    %c0_2 = arith.constant 0 : index
    %1 = vector.load %arg2[%c0_1, %c0_2] : memref<896x64xbf16, #tpu.memory_space<vmem>>, vector<896x64xbf16>
    %cst = arith.constant dense<0.000000e+00> : vector<8x64xf32>
    %2 = tpu.matmul %0, %1, %cst {dimension_numbers = #tpu.dot_dimension_numbers<[1], [0], [0], [1], [0, 0, 1, 1], [], []>} : vector<8x896xbf16>, vector<896x64xbf16>, vector<8x64xf32> -> vector<8x64xf32>
    %c0_3 = arith.constant 0 : index
    %c0_4 = arith.constant 0 : index
    %3 = vector.load %arg3[%c0_3, %c0_4] : memref<1x64xf32, #tpu.memory_space<vmem>>, vector<1x64xf32>
    %4 = vector.broadcast %3 : vector<1x64xf32> to vector<8x64xf32>
    %5 = arith.addf %2, %4 : vector<8x64xf32>
    %6 = math.tanh %5 : vector<8x64xf32>
    %7 = arith.truncf %6 : vector<8x64xf32> to vector<8x64xbf16>
    %c0_5 = arith.constant 0 : index
    %c0_6 = arith.constant 0 : index
    %8 = vector.load %arg4[%c0_5, %c0_6] : memref<64x32xbf16, #tpu.memory_space<vmem>>, vector<64x32xbf16>
    %cst_7 = arith.constant dense<0.000000e+00> : vector<8x32xf32>
    %9 = tpu.matmul %7, %8, %cst_7 {dimension_numbers = #tpu.dot_dimension_numbers<[1], [0], [0], [1], [0, 0, 1, 1], [], []>} : vector<8x64xbf16>, vector<64x32xbf16>, vector<8x32xf32> -> vector<8x32xf32>
    %c0_8 = arith.constant 0 : index
    %c0_9 = arith.constant 0 : index
    %10 = vector.load %arg5[%c0_8, %c0_9] : memref<1x32xf32, #tpu.memory_space<vmem>>, vector<1x32xf32>
    %11 = vector.broadcast %10 : vector<1x32xf32> to vector<8x32xf32>
    %12 = arith.addf %9, %11 : vector<8x32xf32>
    %cst_10 = arith.constant 0.000000e+00 : f32
    %13 = vector.broadcast %cst_10 : f32 to vector<8x32xf32>
    %14 = arith.maximumf %12, %13 : vector<8x32xf32>
    %15 = arith.truncf %14 : vector<8x32xf32> to vector<8x32xbf16>
    %c0_11 = arith.constant 0 : index
    %c0_12 = arith.constant 0 : index
    %16 = vector.load %arg6[%c0_11, %c0_12] : memref<32x128xbf16, #tpu.memory_space<vmem>>, vector<32x128xbf16>
    %cst_13 = arith.constant dense<0.000000e+00> : vector<8x128xf32>
    %17 = tpu.matmul %15, %16, %cst_13 {dimension_numbers = #tpu.dot_dimension_numbers<[1], [0], [0], [1], [0, 0, 1, 1], [], []>} : vector<8x32xbf16>, vector<32x128xbf16>, vector<8x128xf32> -> vector<8x128xf32>
    %c0_14 = arith.constant 0 : index
    %c0_15 = arith.constant 0 : index
    %18 = vector.load %arg7[%c0_14, %c0_15] : memref<1x128xf32, #tpu.memory_space<vmem>>, vector<1x128xf32>
    %19 = vector.broadcast %18 : vector<1x128xf32> to vector<8x128xf32>
    %20 = arith.addf %17, %19 : vector<8x128xf32>
    %cst_16 = arith.constant dense<0xFF800000> : vector<8xf32>
    %21 = vector.multi_reduction <maximumf>, %20, %cst_16 [1] : vector<8x128xf32> to vector<8xf32>
    %22 = vector.shape_cast %21 : vector<8xf32> to vector<8x1xf32>
    %23 = vector.broadcast %22 : vector<8x1xf32> to vector<8x128xf32>
    %24 = arith.subf %20, %23 : vector<8x128xf32>
    %25 = math.exp %24 : vector<8x128xf32>
    %cst_17 = arith.constant dense<0.000000e+00> : vector<8xf32>
    %26 = vector.multi_reduction <add>, %25, %cst_17 [1] : vector<8x128xf32> to vector<8xf32>
    %27 = vector.shape_cast %26 : vector<8xf32> to vector<8x1xf32>
    %28 = tpu.reciprocal %27 : vector<8x1xf32> -> vector<8x1xf32>
    %29 = vector.broadcast %28 : vector<8x1xf32> to vector<8x128xf32>
    %30 = arith.mulf %25, %29 : vector<8x128xf32>
    %c0_18 = arith.constant 0 : index
    %c0_19 = arith.constant 0 : index
    %31 = vector.load %arg8[%c0_18, %c0_19] : memref<8x128xf32, #tpu.memory_space<vmem>>, vector<8x128xf32>
    tpu.vector_store %arg8[%c0_18, %c0_19], %30 {strides = array<i32>} : memref<8x128xf32, #tpu.memory_space<vmem>>, vector<8x128xf32>,
    return
  }
  func.func @transform_0(%arg0: i32) -> (i32, i32) {
    %c0_i32 = arith.constant 0 : i32
    %c0_i32_0 = arith.constant 0 : i32
    return %arg0, %c0_i32 : i32, i32
  }
  func.func @transform_1(%arg0: i32) -> (i32, i32) {
    %c0_i32 = arith.constant 0 : i32
    %c0_i32_0 = arith.constant 0 : i32
    %c0_i32_1 = arith.constant 0 : i32
    return %c0_i32, %c0_i32_0 : i32, i32
  }
  func.func @transform_2(%arg0: i32) -> (i32, i32) {
    %c0_i32 = arith.constant 0 : i32
    %c0_i32_0 = arith.constant 0 : i32
    %c0_i32_1 = arith.constant 0 : i32
    return %c0_i32, %c0_i32_0 : i32, i32
  }
  func.func @transform_3(%arg0: i32) -> (i32, i32) {
    %c0_i32 = arith.constant 0 : i32
    %c0_i32_0 = arith.constant 0 : i32
    %c0_i32_1 = arith.constant 0 : i32
    return %c0_i32, %c0_i32_0 : i32, i32
  }
  func.func @transform_4(%arg0: i32) -> (i32, i32) {
    %c0_i32 = arith.constant 0 : i32
    %c0_i32_0 = arith.constant 0 : i32
    %c0_i32_1 = arith.constant 0 : i32
    return %c0_i32, %c0_i32_0 : i32, i32
  }
  func.func @transform_5(%arg0: i32) -> (i32, i32) {
    %c0_i32 = arith.constant 0 : i32
    %c0_i32_0 = arith.constant 0 : i32
    %c0_i32_1 = arith.constant 0 : i32
    return %c0_i32, %c0_i32_0 : i32, i32
  }
  func.func @transform_6(%arg0: i32) -> (i32, i32) {
    %c0_i32 = arith.constant 0 : i32
    %c0_i32_0 = arith.constant 0 : i32
    %c0_i32_1 = arith.constant 0 : i32
    return %c0_i32, %c0_i32_0 : i32, i32
  }
  func.func @transform_7(%arg0: i32) -> (i32, i32) {
    %c0_i32 = arith.constant 0 : i32
    %c0_i32_0 = arith.constant 0 : i32
    return %arg0, %c0_i32 : i32, i32
  }
}

</mosaic_0001>

<bundles_post_ra>
// kernel: tpu_custom_call.1
= control target key start
LH: loop header
LB: loop body
LE: loop exit
PB: predicated region body
PF: predicated region fallthrough
CT: control target
= control target key end

     0   :  { %v1149_v42 = vmov 0.0   ;;  %vm1150_vm0 = vmmov 0   ;;  %s1431_s0 = inlined_call_operand.vmem [shape: bf16[8,896], index: 0, kind: input, shape index: {}]   ;;  %s1432_s1 = inlined_call_operand.vmem [shape: bf16[896,64], index: 1, kind: input, shape index: {}]   ;;  %s1433_s2 = inlined_call_operand.vmem [shape: f32[1,64], index: 2, kind: input, shape index: {}]   ;;  %s1434_s3 = inlined_call_operand.vmem [shape: bf16[64,32], index: 3, kind: input, shape index: {}]   ;;  %s1435_s4 = inlined_call_operand.vmem [shape: f32[1,32], index: 4, kind: input, shape index: {}]   ;;  %s1436_s5 = inlined_call_operand.vmem [shape: bf16[32,128], index: 5, kind: input, shape index: {}]   ;;  %s1437_s6 = inlined_call_operand.vmem [shape: f32[1,128], index: 6, kind: input, shape index: {}]   ;;  %s1438_s7 = inlined_call_operand.hbm [shape: f32[8,128], index: 7, kind: output, shape index: {}]  }
   0x1   :  { %v1050_v0 = vld [vmem:[%s1432_s1 + $0x40] sm:$0xff]   ;;  %v1054_v4 = vld [vmem:[%s1432_s1 + $0x48] sm:$0xff]   ;;  %v1058_v8 = vld [vmem:[%s1432_s1 + $0x50] sm:$0xff]  }
   0x2   :  { %v1051_v1 = vld [vmem:[%s1432_s1] sm:$0xff]   ;;  %924 = vmatprep.subr.bf16.mxu0 %v1050_v0  ;;  %v1055_v5 = vld [vmem:[%s1432_s1 + $0x8] sm:$0xff]   ;;  %v1059_v9 = vld [vmem:[%s1432_s1 + $0x10] sm:$0xff]  }
   0x3   :  { %v1052_v2 = vld [vmem:[%s1432_s1 + $0xc0] sm:$0xff]   ;;  %925 = vmatpush3.bf16.msra.mxu0 %v1051_v1  ;;  %v1056_v6 = vld [vmem:[%s1432_s1 + $0xc8] sm:$0xff]   ;;  %v1060_v10 = vld [vmem:[%s1432_s1 + $0xd0] sm:$0xff]  }
   0x4   :  { %v1053_v3 = vld [vmem:[%s1432_s1 + $0x80] sm:$0xff]   ;;  %946 = vmatprep.subr.bf16.mxu1 %v1052_v2  ;;  %926 = vmatprep.subr.bf16.mxu0 %v1054_v4  ;;  %v1057_v7 = vld [vmem:[%s1432_s1 + $0x88] sm:$0xff]   ;;  %v1061_v11 = vld [vmem:[%s1432_s1 + $0x90] sm:$0xff]  }
   0x5   :  { %947 = vmatpush3.bf16.msra.mxu1 %v1053_v3  ;;  %v1062_v12 = vld [vmem:[%s1432_s1 + $0x58] sm:$0xff]   ;;  %v1066_v16 = vld [vmem:[%s1432_s1 + $0x60] sm:$0xff]   ;;  %v1070_v20 = vld [vmem:[%s1432_s1 + $0x68] sm:$0xff]  }
   0x6   :  { %948 = vmatprep.subr.bf16.mxu1 %v1056_v6  ;;  %v1063_v13 = vld [vmem:[%s1432_s1 + $0x18] sm:$0xff]   ;;  %v1067_v17 = vld [vmem:[%s1432_s1 + $0x20] sm:$0xff]   ;;  %v1071_v21 = vld [vmem:[%s1432_s1 + $0x28] sm:$0xff]  }
   0x7   :  { %927 = vmatpush3.bf16.msra.mxu0 %v1055_v5  ;;  %v1064_v14 = vld [vmem:[%s1432_s1 + $0xd8] sm:$0xff]   ;;  %v1068_v18 = vld [vmem:[%s1432_s1 + $0xe0] sm:$0xff]   ;;  %v1072_v22 = vld [vmem:[%s1432_s1 + $0xe8] sm:$0xff]  }
   0x8   :  { %928 = vmatprep.subr.bf16.mxu0 %v1058_v8  ;;  %v1065_v15 = vld [vmem:[%s1432_s1 + $0x98] sm:$0xff]   ;;  %v1069_v19 = vld [vmem:[%s1432_s1 + $0xa0] sm:$0xff]   ;;  %v1073_v23 = vld [vmem:[%s1432_s1 + $0xa8] sm:$0xff]  }
   0x9   :  { %949 = vmatpush3.bf16.msra.mxu1 %v1057_v7  ;;  %v1074_v24 = vld [vmem:[%s1432_s1 + $0x70] sm:$0xff]   ;;  %v1078_v28 = vld [vmem:[%s1432_s1 + $0x78] sm:$0xff]   ;;  %v28_v31 = vld [vmem:[%s1431_s0] sm:$0xff] }
   0xa   :  { %950 = vmatprep.subr.bf16.mxu1 %v1060_v10  ;;  %v1075_v25 = vld [vmem:[%s1432_s1 + $0x30] sm:$0xff]   ;;  %v1079_v29 = vld [vmem:[%s1432_s1 + $0x38] sm:$0xff]   ;;  %v851_v32 = vcombine.low %v28_v31, %v28_v31  ;;  %v852_v33 = vcombine.high %v28_v31, %v28_v31  ;;  %v1084_v35 = vld [vmem:[%s1432_s1 + $0x140] sm:$0xff]  }
   0xb   :  { %929 = vmatpush3.bf16.msra.mxu0 %v1059_v9  ;;  %v1076_v26 = vld [vmem:[%s1432_s1 + $0xf0] sm:$0xff]   ;;  %v1080_v30 = vld [vmem:[%s1432_s1 + $0xf8] sm:$0xff]   ;;  %v29_v36 = vld [vmem:[%s1431_s0 + $0x8] sm:$0xff] }
   0xc   :  { %930 = vmatprep.subr.bf16.mxu0 %v1062_v12  ;;  %v1077_v27 = vld [vmem:[%s1432_s1 + $0xb0] sm:$0xff]   ;;  %v1083_v34 = vld [vmem:[%s1432_s1 + $0xb8] sm:$0xff]   ;;  %544 = vmatprep.mubr.bf16.mxu0 %v852_v33  ;;  %v853_v37 = vcombine.low %v29_v36, %v29_v36  ;;  %v854_v38 = vcombine.high %v29_v36, %v29_v36  ;;  %v1087_v39 = vld [vmem:[%s1432_s1 + $0x100] sm:$0xff]  }
   0xd   :  { %951 = vmatpush3.bf16.msra.mxu1 %v1061_v11  ;;  %v1088_v40 = vld [vmem:[%s1432_s1 + $0x180] sm:$0xff]   ;;  %v1089_v41 = vld [vmem:[%s1432_s1 + $0x148] sm:$0xff]   ;;  %v1092_v45 = vld [vmem:[%s1432_s1 + $0x150] sm:$0xff]  }
   0xe   :  { %952 = vmatprep.subr.bf16.mxu1 %v1064_v14  ;;  %584 = vmatprep.mubr.bf16.mxu1 %v854_v38  ;;  %v1090_v43 = vld [vmem:[%s1432_s1 + $0x108] sm:$0xff]   ;;  %v1093_v46 = vld [vmem:[%s1432_s1 + $0x110] sm:$0xff]   ;;  %v1095_v48 = vld [vmem:[%s1432_s1 + $0x158] sm:$0xff]  }
   0xf   :  { %931 = vmatpush3.bf16.msra.mxu0 %v1063_v13  ;;  %v1091_v44 = vld [vmem:[%s1432_s1 + $0x188] sm:$0xff]   ;;  %v1094_v47 = vld [vmem:[%s1432_s1 + $0x190] sm:$0xff]   ;;  %v1096_v49 = vld [vmem:[%s1432_s1 + $0x118] sm:$0xff]  }
  0x10   :  { %932 = vmatprep.subr.bf16.mxu0 %v1066_v16  ;;  %v1098_v50 = vld [vmem:[%s1432_s1 + $0x160] sm:$0xff]   ;;  %v1097_v51 = vld [vmem:[%s1432_s1 + $0x198] sm:$0xff]   ;;  %v1101_v53 = vld [vmem:[%s1432_s1 + $0x168] sm:$0xff]  }
  0x11   :  { %953 = vmatpush3.bf16.msra.mxu1 %v1065_v15  ;;  %v1099_v52 = vld [vmem:[%s1432_s1 + $0x120] sm:$0xff]   ;;  %v1102_v55 = vld [vmem:[%s1432_s1 + $0x128] sm:$0xff]   ;;  %v1104_v56 = vld [vmem:[%s1432_s1 + $0x170] sm:$0xff]  }
  0x12   :  { %954 = vmatprep.subr.bf16.mxu1 %v1068_v18  ;;  %v1100_v54 = vld [vmem:[%s1432_s1 + $0x1a0] sm:$0xff]   ;;  %v1103_v57 = vld [vmem:[%s1432_s1 + $0x1a8] sm:$0xff]   ;;  %v1105_v58 = vld [vmem:[%s1432_s1 + $0x130] sm:$0xff]  }
  0x13   :  { %933 = vmatpush3.bf16.msra.mxu0 %v1067_v17  ;;  %v30_v59 = vld [vmem:[%s1431_s0 + $0x10] sm:$0xff]  ;;  %v1107_v62 = vld [vmem:[%s1432_s1 + $0x178] sm:$0xff]  }
  0x14   :  { %934 = vmatprep.subr.bf16.mxu0 %v1070_v20  ;;  %v1106_v60 = vld [vmem:[%s1432_s1 + $0x1b0] sm:$0xff]   ;;  %v856_v61 = vcombine.high %v30_v59, %v30_v59  ;;  %v1108_v63 = vld [vmem:[%s1432_s1 + $0x138] sm:$0xff]  }
  0x15   :  { %955 = vmatpush3.bf16.msra.mxu1 %v1069_v19 }
  0x16   :  { %956 = vmatprep.subr.bf16.mxu1 %v1072_v22 }
  0x17   :  { %935 = vmatpush3.bf16.msra.mxu0 %v1071_v21 }
  0x18   :  { %936 = vmatprep.subr.bf16.mxu0 %v1074_v24 }
  0x19   :  { %957 = vmatpush3.bf16.msra.mxu1 %v1073_v23 }
  0x1a   :  { %958 = vmatprep.subr.bf16.mxu1 %v1076_v26 }
  0x1b   :  { %937 = vmatpush3.bf16.msra.mxu0 %v1075_v25 }
  0x1c   :  { %938 = vmatprep.subr.bf16.mxu0 %v1078_v28 }
  0x1d   :  { %959 = vmatpush3.bf16.msra.mxu1 %v1077_v27 }
  0x1e   :  { %960 = vmatprep.subr.bf16.mxu1 %v1080_v30 }
  0x1f   :  { %939 = vmatpush3.bf16.msra.mxu0 %v1079_v29 }
  0x20   :  { %968 = vmatprep.subr.bf16.mxu0 %v1084_v35 }
  0x21   :  { %961 = vmatpush3.bf16.msra.mxu1 %v1083_v34 }
  0x22   :  { %545 = vmatmul.mubr.bf16.vlgmr.msra.gmra.mrb[0].mxu0 %v851_v32  ;;  %1007 = vmatprep.subr.bf16.mxu1 %v1149_v42 }
  0x23   :  { %969 = vmatpush3.bf16.msra.mxu0 %v1087_v39  ;;  %624 = vmatprep.mubr.bf16.mxu0 %v856_v61 }
  0x24   :  { %585 = vmatmul.mubr.bf16.vlgmr.msra.gmra.mrb[0].mxu1 %v853_v37  ;;  %970 = vmatprep.subr.bf16.mxu0 %v1089_v41 }
  0x25   :  { %1008 = vmatpush3.bf16.msra.mxu1 %v1088_v40  ;;  %1023 = vmatprep.mubr.msk.bf16.mxu1 %vm1150_vm0, %v1149_v42 }
  0x26   :  { %1009 = vmatprep.subr.bf16.mxu1 %v1149_v42 }
  0x27   :  { %971 = vmatpush3.bf16.msra.mxu0 %v1090_v43 }
  0x28   :  { %972 = vmatprep.subr.bf16.mxu0 %v1092_v45 }
  0x29   :  { %1010 = vmatpush3.bf16.msra.mxu1 %v1091_v44 }
  0x2a   :  { %1011 = vmatprep.subr.bf16.mxu1 %v1149_v42 }
  0x2b   :  { %973 = vmatpush3.bf16.msra.mxu0 %v1093_v46 }
  0x2c   :  { %974 = vmatprep.subr.bf16.mxu0 %v1095_v48 }
  0x2d   :  { %1012 = vmatpush3.bf16.msra.mxu1 %v1094_v47 }
  0x2e   :  { %1013 = vmatprep.subr.bf16.mxu1 %v1149_v42 }
  0x2f   :  { %975 = vmatpush3.bf16.msra.mxu0 %v1096_v49 }
  0x30   :  { %976 = vmatprep.subr.bf16.mxu0 %v1098_v50 }
  0x31   :  { %1014 = vmatpush3.bf16.msra.mxu1 %v1097_v51 }
  0x32   :  { %1015 = vmatprep.subr.bf16.mxu1 %v1149_v42 }
  0x33   :  { %977 = vmatpush3.bf16.msra.mxu0 %v1099_v52 }
  0x34   :  { %978 = vmatprep.subr.bf16.mxu0 %v1101_v53 }
  0x35   :  { %1016 = vmatpush3.bf16.msra.mxu1 %v1100_v54 }
  0x36   :  { %1017 = vmatprep.subr.bf16.mxu1 %v1149_v42 }
  0x37   :  { %979 = vmatpush3.bf16.msra.mxu0 %v1102_v55 }
  0x38   :  { %980 = vmatprep.subr.bf16.mxu0 %v1104_v56 }
  0x39   :  { %1018 = vmatpush3.bf16.msra.mxu1 %v1103_v57 }
  0x3a   :  { %1019 = vmatprep.subr.bf16.mxu1 %v1149_v42 }
  0x3b   :  { %981 = vmatpush3.bf16.msra.mxu0 %v1105_v58 }
  0x3c   :  { %982 = vmatprep.subr.bf16.mxu0 %v1107_v62 }
  0x3d   :  { %12 = vsyncpa [#allocation3], 0  ;;  %1020 = vmatpush3.bf16.msra.mxu1 %v1106_v60  ;;  %v1111_v0 = vld [vmem:[%s1432_s1 + $0x1b8] sm:$0xff]   ;;  %v855_v1 = vcombine.low %v30_v59, %v30_v59  ;;  %v1113_v3 = vld [vmem:[%s1434_s3] sm:$0xff]   ;;  %vm713_vm1 = vcmask 523264   ;;  %vm782_vm2 = vcmask 261120  }
  0x3e   :  { %1021 = vmatprep.subr.bf16.mxu1 %v1149_v42  ;;  %v1112_v2 = vld [vmem:[%s1431_s0 + $0x18] ss:$0 sps:$4 sm:$0xff]   ;;  %v1114_v4 = vld [vmem:[%s1434_s3 + $0x8] sm:$0xff]   ;;  %v1115_v5 = vld [vmem:[%s1434_s3 + $0x10] sm:$0xff]  }
  0x3f   :  { %983 = vmatpush3.bf16.msra.mxu0 %v1108_v63  ;;  %v1116_v6 = vld [vmem:[%s1434_s3 + $0x18] sm:$0xff]   ;;  %v1117_v7 = vld [vmem:[%s1436_s5] sm:$0xff]   ;;  %v1118_v34 = vld [vmem:[%s1436_s5 + $0x8] sm:$0xff]  }
  0x40   :  { %1027 = vmatprep.subr.bf16.mxu0 %v1149_v42  ;;  %v850_v9 = vld [vmem:[%s1433_s2] ss:$0 sm:$0xff] }
  0x41   :  { %1022 = vmatpush3.bf16.msra.mxu1 %v1111_v0  ;;  %v914_v35 = vld [vmem:[%s1435_s4] ss:$0 sm:$0xff]  ;;  %s1151_s4 = smov [#allocation2]  }
  0x42   :  { %625 = vmatmul.mubr.bf16.vlgmr.msra.gmra.mrb[4].mxu0 %v855_v1  ;;  %1039 = vmatprep.subr.bf16.mxu1 %v1149_v42  ;;  %v920_v43 = vld [vmem:[%s1437_s6] ss:$0 sm:$0xff]  ;;  %s842_s5 = sshll.u32 %s1151_s4, 4  ;;  %s843_s5 = int_to_ptr.vmem [resolvable:$true] %s842_s5 }
  0x43   :  { %1035 = vmatprep.mubr.msk.bf16.mxu0 %vm1150_vm0, %v1149_v42  ;;  %1028 = vmatpush3.bf16.msra.mxu0 %v1113_v3  ;;  %s1125_s6 = scalar_lea.vmem %s843_s5, 128  ;;  %p1130_p1 = scmp.lt.s32.totalorder %s843_s5, %s843_s5 }
  0x44   :  { %1024 = vmatmul.mubr.bf16.vlgmr.msra.gmra.mrb[4].mxu1 %v1112_v2  ;;  %1029 = vmatprep.subr.bf16.mxu0 %v1149_v42  ;;  %p1126_p0 = scmp.ne.s32.totalorder %s843_s5, %s1125_s6  ;;  %p1131_p2 = scmp.lt.s32.totalorder %s1125_s6, %s1125_s6 }
  0x45   :  { %1043 = vmatprep.mubr.msk.bf16.mxu1 %vm1150_vm0, %v1149_v42  ;;  %1040 = vmatpush3.bf16.msra.mxu1 %v1117_v7 }
  0x46   :  { %1041 = vmatprep.subr.bf16.mxu1 %v1149_v42  ;;  %p1132_p3 = por %p1131_p2, %p1130_p1 }
  0x47   :  { %1030 = vmatpush3.bf16.msra.mxu0 %v1114_v4 }
  0x48   :  { %1031 = vmatprep.subr.bf16.mxu0 %v1149_v42  ;;  %p1133_p4 = pnand %p1132_p3, %p1126_p0 }
  0x49   :  { %1042 = vmatpush3.bf16.msra.mxu1 %v1118_v34 }
  0x4b   :  { %1032 = vmatpush3.bf16.msra.mxu0 %v1115_v5 }
  0x4c   :  { %1033 = vmatprep.subr.bf16.mxu0 %v1149_v42 }
  0x4f   :  { %1034 = vmatpush3.bf16.msra.mxu0 %v1116_v6 }
  0xf5   :  { %v940_v8 = vpop.f32.mrb[0].mxu0 }
  0xf6   :  { %v941_v10 = vpop.f32.mrb[1].mxu0 }
  0xf7   :  { %v942_v11 = vadd.f32 %v941_v10, %v940_v8  ;;  %v943_v12 = vpop.f32.mrb[2].mxu0  ;;  %v962_v13 = vpop.f32.mrb[0].mxu1 }
  0xf8   :  { %v944_v14 = vpop.f32.mrb[3].mxu0  ;;  %v963_v15 = vpop.f32.mrb[1].mxu1 }
  0xf9   :  { %v547_v16 = vadd.f32 %v942_v11, %v850_v9  ;;  %v964_v17 = vadd.f32 %v963_v15, %v962_v13  ;;  %v965_v18 = vpop.f32.mrb[2].mxu1 }
  0xfa   :  { %v966_v19 = vpop.f32.mrb[3].mxu1 }
  0xfb   :  { %v587_v20 = vadd.f32 %v964_v17, %v547_v16 }
 0x115   :  { %v984_v21 = vpop.f32.mrb[4].mxu0 }
 0x116   :  { %v985_v22 = vpop.f32.mrb[5].mxu0 }
 0x117   :  { %v986_v23 = vadd.f32 %v985_v22, %v984_v21  ;;  %v987_v24 = vpop.f32.mrb[6].mxu0  ;;  %v666_v25 = vpop.f32.mrb[4].mxu1 }
 0x118   :  { %v988_v26 = vpop.f32.mrb[7].mxu0  ;;  %v1025_v27 = vpop.f32.mrb[5].mxu1 }
 0x119   :  { %v627_v28 = vadd.f32 %v986_v23, %v587_v20  ;;  %v669_v29 = vpop.f32.mrb[6].mxu1 }
 0x11a   :  { %v1026_v30 = vpop.f32.mrb[7].mxu1 }
 0x11b   :  { %v667_v31 = vadd.f32 %v666_v25, %v627_v28 }
 0x11d   :  { %1119 = vtanh.f32 %v667_v31 }
 0x127   :  { %v1120_v32 = vpop.eup %1119 }
 0x128   :  { %v673_v33 = vpack.c.bf16 %v1120_v32, %v1120_v32 }
 0x12a   :  { %1036 = vmatmul.mubr.msk.bf16.vlgmr.msra.gmra.mrb[8].mxu0 %vm713_vm1, %v673_v33 }
 0x1fd   :  { %v751_v36 = vpop.f32.mrb[8].mxu0 }
 0x1fe   :  { %v752_v37 = vadd.f32 %v914_v35, %v751_v36  ;;  %v1037_v38 = vpop.f32.mrb[9].mxu0 }
 0x1ff   :  { %v754_v39 = vpop.f32.mrb[10].mxu0 }
 0x200   :  { %v757_v40 = vmax.f32 %v752_v37, 0.0  ;;  %v1038_v41 = vpop.f32.mrb[11].mxu0 }
 0x202   :  { %v758_v42 = vpack.c.bf16 %v757_v40, %v757_v40 }
 0x204   :  { %1044 = vmatmul.mubr.msk.bf16.vlgmr.msra.gmra.mrb[8].mxu1 %vm782_vm2, %v758_v42 }
 0x2d7   :  { %v820_v44 = vpop.f32.mrb[8].mxu1 }
 0x2d8   :  { %v821_v45 = vadd.f32 %v920_v43, %v820_v44  ;;  %v1045_v46 = vpop.f32.mrb[9].mxu1 }
 0x2d9   :  { %v823_v47 = vpop.f32.mrb[10].mxu1 }
 0x2da   :  { %826 = vmax.xlane.f32.xlu0 %v821_v45  ;;  %v1046_v48 = vpop.f32.mrb[11].mxu1 }
 0x367   :  { %v827_v49 = vpop.xlane.xlu0 %826 }
 0x368   :  { %v828_v50 = vsub.f32 %v821_v45, %v827_v49 }
 0x36a   :  { %v829_v51 = vmul.f32 1.442695, %v828_v50 }
 0x36c   :  { %1121 = vpow2.f32 %v829_v51 }
 0x376   :  { %v1122_v52 = vpop.eup %1121 }
 0x377   :  { %831 = vadd.xlane.f32.xlu0 %v1122_v52 }
 0x404   :  { %v832_v53 = vpop.xlane.xlu0 %831 }
 0x405   :  { %1123 = vrcp.f32 %v832_v53 }
 0x40f   :  { %v1124_v54 = vpop.eup %1123 }
 0x410   :  { %v834_v55 = vmul.f32 %v1124_v54, %v1122_v52 }
 0x412   :  { %835 = vst [vmem:[#allocation2] sm:$0xff] %v834_v55 }
 0x413   :  { %1136 = shalt.err (!%p1133_p4)
}
 0x414   :  { %s1137_s22 = scalar_lea.hbm %s1438_s7, 128 }
 0x415   :  { %p1138_p5 = scmp.ne.s32.totalorder %s1438_s7, %s1137_s22  ;;  %p1141_p6 = scmp.lt.u32.totalorder %s1137_s22, %s1438_s7 }
 0x417   :  { %p1143_p7 = pnand %p1141_p6, %p1138_p5 }
 0x419   :  { %1146 = shalt.err (!%p1143_p7)
}
 0x41a   :  { %845 = dma.vmem_to_hbm [thread:$0]  %s843_s5, 128, %s1438_s7, [#allocation3]  }
 0x41b   :  { %1147 = dma.done.wait [#allocation3], 128  }
 0x41c   :  { %1148 = vsyncadd [#allocation3], 4294967168 }
 0x41d   :  { %849 = vsyncpa [#allocation3], 1 }

</bundles_post_ra>
